<compile_context>
chip_gen: v5e
topology: v5e:2x2
jax: 0.10.0
libtpu: 0.0.40
codegen_flags: <defaults>
</compile_context>

<pallas_src>
import functools

import jax
import jax.numpy as jnp
import numpy as np
from jax.experimental import pallas as pl
from jax.experimental.pallas import tpu as pltpu

_EPS = 1e-5  # torch.nn.InstanceNorm2d default eps


def _round_up(x, m):
    return ((x + m - 1) // m) * m


def _convblock_kernel(xs_ref, w_ref, mask_ref, alpha_ref, out_ref, *,
                      KH, KW, stride, Wp, Ppad, inv_count, Nb):
    # xs_ref:    [Nb, s, Cin, L]   row-residue, row-flattened padded input slabs
    # w_ref:     [Cout, K]         K = KH*KW*Cin, tap-major ((kh,kw) major, cin minor)
    # mask_ref:  [1, Ppad]         1.0 on valid output lanes (lane = row*Wp + s*col)
    # alpha_ref: [1, 1]            PReLU slope (SMEM scalar)
    # out_ref:   [Nb, Cout, Ppad]  lane-dense embedded-raster output
    w_mat = w_ref[...]                     # [Cout, K]
    mask = mask_ref[...]                   # [1, Ppad]
    alpha = alpha_ref[0, 0]

    for nb in range(Nb):                   # static unrolled batch fold
        # Load each residue slab once; every tap is a constant-offset lane slice.
        slabs = [xs_ref[nb, r, :, :] for r in range(stride)]     # each [Cin, L]
        taps = []
        for kh in range(KH):
            q, r = divmod(kh, stride)
            for kw in range(KW):
                off = q * Wp + kw
                taps.append(slabs[r][:, off:off + Ppad])          # [Cin, Ppad]
        # Stack the contraction dim on sublanes -> one dense MXU matmul.
        rhs = jnp.concatenate(taps, axis=0)                        # [K, Ppad]
        acc = jnp.dot(w_mat, rhs,
                      preferred_element_type=jnp.float32)          # [Cout, Ppad]

        # InstanceNorm2d(affine=False), single pass over the valid lanes:
        # mean = E[x], var = E[x^2] - mean^2 (biased, clamped at 0).
        m = acc * mask
        mean = jnp.sum(m, axis=1, keepdims=True) * inv_count
        ex2 = jnp.sum(m * m, axis=1, keepdims=True) * inv_count
        var = jnp.maximum(ex2 - mean * mean, 0.0)
        y = (acc - mean) * jax.lax.rsqrt(var + _EPS)               # rsqrt -> EUP

        # PReLU (single shared slope).
        out_ref[nb] = jnp.where(y >= 0.0, y, alpha * y)


def conv_block(x, weight, bias, alpha, *, stride, padding, grid_steps=None):
    """x: [N, Cin, H, W] f32. weight: [Cout, Cin, KH, KW]. bias: [Cout].

    bias is accepted for API parity but unused: a per-channel constant is
    exactly removed by InstanceNorm2d(affine=False)'s mean subtraction and
    leaves the variance unchanged, so the forward result is identical.
    """
    del bias
    N, Cin, H, W = x.shape
    Cout, _, KH, KW = weight.shape
    s = stride
    Hp = H + 2 * padding
    Wp = W + 2 * padding
    OH = (Hp - KH) // s + 1
    OW = (Wp - KW) // s + 1
    P = OH * OW
    q_max = (KH - 1) // s
    Hh = q_max + OH                       # rows needed per residue slab
    Hp_total = max(Hp, s * Hh)            # pad H so every residue has Hh rows
    Ppad = _round_up(OH * Wp, 128)        # lane-dense accumulator / output width
    L = q_max * Wp + (KW - 1) + Ppad      # slab lane length so every tap slice fits
    K = KH * KW * Cin

    # Grid: 2 parallel steps shard the batch across both v7x TensorCores;
    # on single-core parts (v5e/v6e) pass grid_steps=1 to collapse the grid.
    if grid_steps is None:
        grid_steps = 2 if (N >= 2 and N % 2 == 0) else 1
    if N % grid_steps != 0:
        grid_steps = 1
    Nb = N // grid_steps

    x = x.astype(jnp.float32)

    # --- minimal prep: one pad + per-residue row select + row-flatten (+ lane pad) ---
    x_pad = jnp.pad(x, ((0, 0), (0, 0),
                        (padding, padding + (Hp_total - Hp)),
                        (padding, padding)))
    slabs = []
    for r in range(s):
        sl = x_pad[:, :, r::s, :][:, :, :Hh, :].reshape(N, Cin, Hh * Wp)
        slabs.append(jnp.pad(sl, ((0, 0), (0, 0), (0, L - Hh * Wp))))
    xs = jnp.stack(slabs, axis=1)                                  # [N, s, Cin, L]

    # Tap-major weight matrix: column (kh*KW + kw)*Cin + cin <-> weight[:, cin, kh, kw].
    w_mat = jnp.transpose(weight, (0, 2, 3, 1)).reshape(Cout, K).astype(jnp.float32)

    # Valid-lane mask for the embedded OHxWp raster (lane = row*Wp + s*col).
    lane = np.arange(Ppad)
    row, col = lane // Wp, lane % Wp
    valid = (row < OH) & (col < s * OW) & (col % s == 0)
    mask = jnp.asarray(valid.astype(np.float32)).reshape(1, Ppad)

    alpha_arr = jnp.asarray(alpha, jnp.float32).reshape(1, 1)

    # bf16 MXU operands only once the contraction is wide enough to pay off.
    if K >= 128:
        xs = xs.astype(jnp.bfloat16)
        w_mat = w_mat.astype(jnp.bfloat16)

    kernel = functools.partial(_convblock_kernel, KH=KH, KW=KW, stride=s,
                               Wp=Wp, Ppad=Ppad, inv_count=1.0 / P, Nb=Nb)

    out = pl.pallas_call(
        kernel,
        out_shape=jax.ShapeDtypeStruct((N, Cout, Ppad), jnp.float32),
        grid=(grid_steps,),
        in_specs=[
            pl.BlockSpec((Nb, s, Cin, L), lambda i: (i, 0, 0, 0)),
            pl.BlockSpec((Cout, K), lambda i: (0, 0)),
            pl.BlockSpec((1, Ppad), lambda i: (0, 0)),
            pl.BlockSpec(memory_space=pltpu.MemorySpace.SMEM),     # PReLU alpha
        ],
        out_specs=pl.BlockSpec((Nb, Cout, Ppad), lambda i: (i, 0, 0)),
        compiler_params=pltpu.CompilerParams(
            dimension_semantics=("parallel",)),
    )(xs, w_mat, mask, alpha_arr)

    # Embedded raster [N, Cout, Ppad] -> NCHW: free reshape + one small strided slice.
    y = out[:, :, :OH * Wp].reshape(N, Cout, OH, Wp)
    return y[:, :, :, : s * (OW - 1) + 1 : s]


def _reference(x, weight, bias, alpha, *, stride, padding):
    y = jax.lax.conv_general_dilated(
        x, weight, (stride, stride), [(padding, padding), (padding, padding)],
        dimension_numbers=("NCHW", "OIHW", "NCHW"),
    ) + bias.reshape(1, -1, 1, 1)
    mean = y.mean(axis=(2, 3), keepdims=True)
    var = ((y - mean) ** 2).mean(axis=(2, 3), keepdims=True)
    y = (y - mean) / jnp.sqrt(var + _EPS)
    return jnp.where(y >= 0.0, y, alpha * y)


if __name__ == "__main__":
    # ConvBlock(input_size=4, output_size=8, kernel_size=3, stride=1, padding=1)
    N, Cin, H, W = 2, 4, 16, 16
    Cout, KH, KW = 8, 3, 3
    stride, padding = 1, 1

    key = jax.random.PRNGKey(0)
    kx, kw_, kb = jax.random.split(key, 3)
    x = jax.random.normal(kx, (N, Cin, H, W), dtype=jnp.float32)
    fan_in = Cin * KH * KW
    weight = jax.random.normal(kw_, (Cout, Cin, KH, KW), dtype=jnp.float32) / jnp.sqrt(fan_in)
    bias = jax.random.normal(kb, (Cout,), dtype=jnp.float32) * 0.1
    alpha = 0.25  # torch PReLU default init

    out = conv_block(x, weight, bias, alpha, stride=stride, padding=padding)
    out = jax.block_until_ready(out)

    ref = _reference(x, weight, bias, alpha, stride=stride, padding=padding)
    assert out.shape == (N, Cout, H, W)
    np.testing.assert_allclose(np.asarray(out), np.asarray(ref), rtol=1e-4, atol=1e-4)

    print("KERNEL_OK")
</pallas_src>

<mosaic_0001>
module attributes {stable_mosaic.version = 11 : i64} {
  func.func @_convblock_kernel(%arg0: i32, %arg1: memref<1x1x4x422xf32, #tpu.memory_space<vmem>>, %arg2: memref<8x36xf32, #tpu.memory_space<vmem>>, %arg3: memref<1x384xf32, #tpu.memory_space<vmem>>, %arg4: memref<1x1xf32, #tpu.memory_space<smem>>, %arg5: memref<1x8x384xf32, #tpu.memory_space<vmem>>) attributes {dimension_semantics = [#tpu.dimension_semantics<parallel>], iteration_bounds = array<i64: 2>, scalar_prefetch = 0 : i64, scratch_operands = 0 : i64, tpu.core_type = #tpu.core_type<tc>, window_params = [{transform_indices = @transform_0, window_bounds = array<i64: 1, 1, 4, 422>}, {pipeline_mode = #tpu.pipeline_mode<synchronous>, transform_indices = @transform_1, window_bounds = array<i64: 8, 36>}, {pipeline_mode = #tpu.pipeline_mode<synchronous>, transform_indices = @transform_2, window_bounds = array<i64: 1, 384>}, {transform_indices = @transform_3, window_bounds = array<i64: 1, 1>}, {transform_indices = @transform_4, window_bounds = array<i64: 1, 8, 384>}]} {
    %c0 = arith.constant 0 : index
    %c0_0 = arith.constant 0 : index
    %0 = vector.load %arg2[%c0, %c0_0] : memref<8x36xf32, #tpu.memory_space<vmem>>, vector<8x36xf32>
    %c0_1 = arith.constant 0 : index
    %c0_2 = arith.constant 0 : index
    %1 = vector.load %arg3[%c0_1, %c0_2] : memref<1x384xf32, #tpu.memory_space<vmem>>, vector<1x384xf32>
    %c0_3 = arith.constant 0 : index
    %c0_4 = arith.constant 0 : index
    %2 = memref.load %arg4[%c0_3, %c0_4] : memref<1x1xf32, #tpu.memory_space<smem>>
    %c0_5 = arith.constant 0 : index
    %c0_6 = arith.constant 0 : index
    %c0_7 = arith.constant 0 : index
    %c0_8 = arith.constant 0 : index
    %3 = vector.load %arg1[%c0_5, %c0_6, %c0_7, %c0_8] : memref<1x1x4x422xf32, #tpu.memory_space<vmem>>, vector<1x1x4x422xf32>
    %4 = vector.shape_cast %3 : vector<1x1x4x422xf32> to vector<4x422xf32>
    %5 = vector.extract_strided_slice %4 {offsets = [0, 0], sizes = [4, 384], strides = [1, 1]} : vector<4x422xf32> to vector<4x384xf32>
    %6 = vector.extract_strided_slice %4 {offsets = [0, 1], sizes = [4, 384], strides = [1, 1]} : vector<4x422xf32> to vector<4x384xf32>
    %7 = vector.extract_strided_slice %4 {offsets = [0, 2], sizes = [4, 384], strides = [1, 1]} : vector<4x422xf32> to vector<4x384xf32>
    %8 = vector.extract_strided_slice %4 {offsets = [0, 18], sizes = [4, 384], strides = [1, 1]} : vector<4x422xf32> to vector<4x384xf32>
    %9 = vector.extract_strided_slice %4 {offsets = [0, 19], sizes = [4, 384], strides = [1, 1]} : vector<4x422xf32> to vector<4x384xf32>
    %10 = vector.extract_strided_slice %4 {offsets = [0, 20], sizes = [4, 384], strides = [1, 1]} : vector<4x422xf32> to vector<4x384xf32>
    %11 = vector.extract_strided_slice %4 {offsets = [0, 36], sizes = [4, 384], strides = [1, 1]} : vector<4x422xf32> to vector<4x384xf32>
    %12 = vector.extract_strided_slice %4 {offsets = [0, 37], sizes = [4, 384], strides = [1, 1]} : vector<4x422xf32> to vector<4x384xf32>
    %13 = vector.extract_strided_slice %4 {offsets = [0, 38], sizes = [4, 384], strides = [1, 1]} : vector<4x422xf32> to vector<4x384xf32>
    %14 = tpu.concatenate %5, %6, %7, %8, %9, %10, %11, %12, %13 in 0 : vector<4x384xf32>, vector<4x384xf32>, vector<4x384xf32>, vector<4x384xf32>, vector<4x384xf32>, vector<4x384xf32>, vector<4x384xf32>, vector<4x384xf32>, vector<4x384xf32> -> vector<36x384xf32>
    %cst = arith.constant dense<0.000000e+00> : vector<8x384xf32>
    %15 = tpu.matmul %0, %14, %cst {dimension_numbers = #tpu.dot_dimension_numbers<[1], [0], [0], [1], [0, 0, 1, 1], [], []>} : vector<8x36xf32>, vector<36x384xf32>, vector<8x384xf32> -> vector<8x384xf32>
    %16 = vector.broadcast %1 : vector<1x384xf32> to vector<8x384xf32>
    %17 = arith.mulf %15, %16 : vector<8x384xf32>
    %cst_9 = arith.constant dense<0.000000e+00> : vector<8xf32>
    %18 = vector.multi_reduction <add>, %17, %cst_9 [1] : vector<8x384xf32> to vector<8xf32>
    %19 = vector.shape_cast %18 : vector<8xf32> to vector<8x1xf32>
    %cst_10 = arith.constant 3.906250e-03 : f32
    %20 = vector.broadcast %cst_10 : f32 to vector<8x1xf32>
    %21 = arith.mulf %19, %20 : vector<8x1xf32>
    %22 = arith.mulf %17, %17 : vector<8x384xf32>
    %cst_11 = arith.constant dense<0.000000e+00> : vector<8xf32>
    %23 = vector.multi_reduction <add>, %22, %cst_11 [1] : vector<8x384xf32> to vector<8xf32>
    %24 = vector.shape_cast %23 : vector<8xf32> to vector<8x1xf32>
    %cst_12 = arith.constant 3.906250e-03 : f32
    %25 = vector.broadcast %cst_12 : f32 to vector<8x1xf32>
    %26 = arith.mulf %24, %25 : vector<8x1xf32>
    %27 = arith.mulf %21, %21 : vector<8x1xf32>
    %28 = arith.subf %26, %27 : vector<8x1xf32>
    %cst_13 = arith.constant 0.000000e+00 : f32
    %29 = vector.broadcast %cst_13 : f32 to vector<8x1xf32>
    %30 = arith.maximumf %28, %29 : vector<8x1xf32>
    %31 = vector.broadcast %21 : vector<8x1xf32> to vector<8x384xf32>
    %32 = arith.subf %15, %31 : vector<8x384xf32>
    %cst_14 = arith.constant 9.99999974E-6 : f32
    %33 = vector.broadcast %cst_14 : f32 to vector<8x1xf32>
    %34 = arith.addf %30, %33 : vector<8x1xf32>
    %35 = math.rsqrt %34 : vector<8x1xf32>
    %36 = vector.broadcast %35 : vector<8x1xf32> to vector<8x384xf32>
    %37 = arith.mulf %32, %36 : vector<8x384xf32>
    %cst_15 = arith.constant 0.000000e+00 : f32
    %38 = vector.broadcast %cst_15 : f32 to vector<8x384xf32>
    %39 = arith.cmpf oge, %37, %38 : vector<8x384xf32>
    %40 = vector.broadcast %2 : f32 to vector<8x384xf32>
    %41 = arith.mulf %40, %37 : vector<8x384xf32>
    %42 = arith.select %39, %37, %41 : vector<8x384xi1>, vector<8x384xf32>
    %c0_16 = arith.constant 0 : index
    %c0_17 = arith.constant 0 : index
    %c0_18 = arith.constant 0 : index
    %43 = vector.load %arg5[%c0_16, %c0_17, %c0_18] : memref<1x8x384xf32, #tpu.memory_space<vmem>>, vector<1x8x384xf32>
    %44 = vector.shape_cast %43 : vector<1x8x384xf32> to vector<8x384xf32>
    %45 = vector.shape_cast %42 : vector<8x384xf32> to vector<1x8x384xf32>
    tpu.vector_store %arg5[%c0_16, %c0_17, %c0_18], %45 {strides = array<i32>} : memref<1x8x384xf32, #tpu.memory_space<vmem>>, vector<1x8x384xf32>,
    return
  }
  func.func @transform_0(%arg0: i32) -> (i32, i32, i32, i32) {
    %c0_i32 = arith.constant 0 : i32
    %c0_i32_0 = arith.constant 0 : i32
    %c0_i32_1 = arith.constant 0 : i32
    %c0_i32_2 = arith.constant 0 : i32
    return %arg0, %c0_i32, %c0_i32_0, %c0_i32_1 : i32, i32, i32, i32
  }
  func.func @transform_1(%arg0: i32) -> (i32, i32) {
    %c0_i32 = arith.constant 0 : i32
    %c0_i32_0 = arith.constant 0 : i32
    %c0_i32_1 = arith.constant 0 : i32
    return %c0_i32, %c0_i32_0 : i32, i32
  }
  func.func @transform_2(%arg0: i32) -> (i32, i32) {
    %c0_i32 = arith.constant 0 : i32
    %c0_i32_0 = arith.constant 0 : i32
    %c0_i32_1 = arith.constant 0 : i32
    return %c0_i32, %c0_i32_0 : i32, i32
  }
  func.func @transform_3(%arg0: i32) -> (i32, i32) {
    %c0_i32 = arith.constant 0 : i32
    %c0_i32_0 = arith.constant 0 : i32
    %c0_i32_1 = arith.constant 0 : i32
    return %c0_i32, %c0_i32_0 : i32, i32
  }
  func.func @transform_4(%arg0: i32) -> (i32, i32, i32) {
    %c0_i32 = arith.constant 0 : i32
    %c0_i32_0 = arith.constant 0 : i32
    %c0_i32_1 = arith.constant 0 : i32
    return %arg0, %c0_i32, %c0_i32_0 : i32, i32, i32
  }
}

</mosaic_0001>

<bundles_post_ra>
// kernel: tpu_custom_call.1
= control target key start
LH: loop header
LB: loop body
LE: loop exit
PB: predicated region body
PF: predicated region fallthrough
CT: control target
= control target key end

     0   :  { %s1258_s0 = inlined_call_operand.hbm [shape: f32[2,1,4,422], index: 0, kind: input, shape index: {}]   ;;  %s1259_s1 = inlined_call_operand.hbm [shape: f32[8,36], index: 1, kind: input, shape index: {}]   ;;  %s1260_s2 = inlined_call_operand.vmem [shape: f32[1,384], index: 2, kind: input, shape index: {}]   ;;  %s1261_s3 = inlined_call_operand.<no memory space> [shape: f32[1,1], index: 3, kind: input, shape index: {}]   ;;  %s1262_s4 = inlined_call_operand.hbm [shape: f32[2,8,384], index: 4, kind: output, shape index: {}]  }
   0x1   :  { %9 = sst [smem:[#allocation2]] %s1261_s3 }
   0x2   :  { %10 = vsyncpa [#allocation4], 0 }
   0x3   :  { %12 = vsyncpa [#allocation4 + $0x1], 0 }
   0x4   :  { %13 = vsyncpa [#allocation7], 0 }
   0x5   :  { %14 = vsyncpa [#allocation5], 0 }
   0x6   :  { %16 = vsyncpa [#allocation5 + $0x1], 0  ;;  %s989_s17 = smov 0   ;;  %s991_s18 = smov 0  }
   0x7   :  { %s993_s19 = smov 0   ;;  %s995_s20 = smov 0  }
   0x8 LB: > { %s1010_s3 = sadd.s32 4294967295, %s950_s20   ;;  %s661_s21 = sadd.s32 4294967294, %s950_s20   ;;  %s950_s20 = sphi %s995_s20, %s1272_s20   ;;  %s946_s19 = sphi %s993_s19, %s1271_s19   ;;  %s942_s18 = sphi %s991_s18, %s1270_s18   ;;  %s938_s17 = sphi %s989_s17, %s1269_s17  }
   0x9   : > { %p42_p0 = scmp.ne.s32.totalorder %s942_s18, %s938_s17  ;;  %p43_p1 = scmp.eq.s32.totalorder %s1010_s3, 0 }
   0xa   : > { %p129_p2 = scmp.eq.s32.totalorder %s1010_s3, 1  ;;  %p135_p3 = scmp.eq.s32.totalorder %s661_s21, 1 }
   0xb   : > { %p1019_p4 = por %p43_p1, %p42_p0  ;;  %p662_p5 = scmp.ge.s32.totalorder %s950_s20, 1 }
   0xc   : > { %p1024_p6 = por %p135_p3, %p42_p0  ;;  %p142_p7 = scmp.lt.s32.totalorder %s950_s20, 3 }
   0xd   : > { %s154_s26 = sshll.u32 %s1259_s1, 4  ;;  %s952_s28 = smov [#allocation6]   ;;  %s155_s26 = int_to_ptr.hbm [resolvable:$true] %s154_s26 }
   0xe   : > { %p1032_p8 = pnand %p662_p5, %p142_p7  ;;  %s156_s29 = sshll.u32 %s952_s28, 4  ;;  %s157_s29 = int_to_ptr.vmem [resolvable:$true] %s156_s29 }
   0xf   : > { %s1042_s30 = sadd.s32 1, %s950_s20   ;;  %s29_s5 = sadd.s32 1, %s946_s19 }
  0x10   : > { %p691_p10 = pneg %p1032_p8  ;;  %s26_s6 = ssub.s32 %s950_s20, %s1042_s30 }
  0x11   : > { %p27_p12 = scmp.eq.s32.totalorder %s26_s6, 0  ;;  %p36_p13 = scmp.ne.s32.totalorder %s946_s19, %s942_s18 }
  0x12   : > { %p692_p11 = pnand %p691_p10, %p43_p1  ;;  %p37_p0 = scmp.eq.s32.totalorder %s950_s20, 0 }
  0x13   : > { %s1051_s7 = scalar_select %p27_p12, %s946_s19, %s29_s5  }
  0x14   : > { %694 = dma.hbm_to_vmem [thread:$0]  (!%p692_p11), %s155_s26, 128, %s157_s29, [#allocation7]  }
  0x15   : > { %p1055_p3 = por %p129_p2, %p36_p13  ;;  %p704_p5 = scmp.lt.s32.totalorder %s950_s20, 2 }
  0x16   : > { %s173_s9 = sand.u32 1, %s946_s19   ;;  %s680_s10 = sshll.u32 %s950_s20, 4 }
  0x17   : > { %p38_p7 = por %p37_p0, %p36_p13  ;;  %s665_s11 = sshll.u32 %s173_s9, 4 }
  0x18   : > { %s182_s14 = scalar_lea.hbm %s1258_s0, %s680_s10  ;;  %s177_s16 = scalar_lea.vmem [#allocation3], %s665_s11 }
  0x19   : > { %s184_s15 = sshll.u32 %s182_s14, 4  ;;  %s186_s21 = sshll.u32 %s177_s16, 4  ;;  %s185_s15 = int_to_ptr.hbm [resolvable:$true] %s184_s15  ;;  %s187_s21 = int_to_ptr.vmem [resolvable:$true] %s186_s21 }
  0x1a   : > { %p1065_p10 = pnand %p704_p5, %p38_p7  ;;  %s174_s25 = scalar_lea.sflag [#allocation4], %s173_s9 }
  0x1b   : > { %s850_s26 = sshra.s32 %s185_s15, 4  ;;  %s857_s6 = scalar_lea.hbm %s1258_s0, 32  ;;  %s851_s26 = int_to_ptr.hbm [resolvable:$true] %s850_s26 }
  0x1c   : > { %s852_s28 = scalar_lea.hbm %s851_s26, 16  ;;  %p854_p11 = pneg %p1065_p10 }
  0x1d   : > { %p853_p2 = scmp.ne.s32.totalorder %s851_s26, %s852_s28  ;;  %p858_p0 = scmp.lt.s32.totalorder %s851_s26, %s1258_s0 }
  0x1e   : > { %p859_p5 = scmp.lt.s32.totalorder %s857_s6, %s852_s28 }
  0x1f   : > { %p855_p12 = pnand %p854_p11, %p853_p2 }
  0x20   : > { %p860_p7 = por %p859_p5, %p858_p0 }
  0x21   : > { %p856_p13 = pneg %p855_p12 }
  0x23   : > { %p861_p9 = pnand %p860_p7, %p856_p13 }
  0x25   : > { %864 = shalt.err (!%p861_p9)
}
  0x26   : > { %698 = dma.hbm_to_vmem [thread:$0]  (!%p1065_p10), %s185_s15, 256, %s187_s21, %s174_s25  }
  0x27   : > { %195 = sbr.rel (%p1032_p8) target bundleno = 552 (0x228), region = 36  ;;  %s1082_s9 = sand.u32 (!%p1032_p8), 1, %s942_s18  }
  0x28   : > { %s669_s12 = sshll.u32 (!%p1032_p8), %s1082_s9, 4  ;;  %s198_s13 = scalar_lea.sflag (!%p1032_p8), [#allocation4], %s1082_s9 }
  0x29   : > { %s201_s14 = scalar_lea.vmem (!%p1032_p8), [#allocation3], %s669_s12 }
  0x2c   : > { %925 = dma.done.wait (%p1019_p4), %s198_s13, 256  }
  0x2d   : > { %927 = vsyncadd (%p1019_p4), %s198_s13, 4294967040 }
  0x2e   : > { %929 = dma.done.wait (%p43_p1), [#allocation7], 128  }
  0x2f   : > { %931 = vsyncadd (%p43_p1), [#allocation7], 4294967168  ;;  %v1094_v0 = vld [vmem:[%s201_s14 + $0x8] sm:$0xff]  ;;  %v1096_v1 = vld [vmem:[%s201_s14] sm:$0xff]  ;;  %s953_s22 = smov 127   ;;  %s954_s27 = smov 126  }
  0x30   : > { %241 = vst [vmem:[#allocation1 + $0x10] ss:$2 sm:$0xff] %v1094_v0  ;;  %s955_s15 = smov 110   ;;  %s956_s16 = smov 109   ;;  %vm331_vm0 = vcmask 891904   ;;  %vm354_vm1 = vcmask 883712  }
  0x31   : > { %239 = vst [vmem:[#allocation1] ss:$2 sm:$0xff] %v1096_v1  ;;  %s957_s21 = smov 108   ;;  %s958_s24 = smov 92   ;;  %vm286_vm2 = vcmask 1031168   ;;  %vm309_vm3 = vcmask 900096  }
  0x32   : > { %s959_s25 = smov 91   ;;  %s960_s26 = smov 90   ;;  %vm421_vm4 = vcmask 736256   ;;  %vm376_vm5 = vcmask 752640   ;;  %vm399_vm6 = vcmask 744448   ;;  %vm425_vm7 = vcmask 1043456  }
  0x33   : > { %vm264_vm8 = vcmask 1039360   ;;  %vm438_vm9 = vcmask 293888   ;;  %s234_s5 = sld [smem:[#allocation2]]  ;;  %s681_s6 = smul.u32 24, %s1082_s9 }
  0x34   : > { %s682_s10 = smul.u32 24, %s1010_s3 }
  0x35   : > { %s231_s3 = scalar_lea.vmem [#allocation8], %s681_s6 }
  0x36   : > { %s576_s13 = scalar_lea.hbm %s1262_s4, %s682_s10  ;;  %s578_s14 = sshll.u32 %s231_s3, 4  ;;  %s579_s14 = int_to_ptr.vmem [resolvable:$true] %s578_s14 }
  0x37   : > { %v1100_v2 = vld.sshfl [vmem:[#allocation1 + $0x10] sm:$0xff pattern:$0x75316420] }
  0x38   : > { %251 = vst [vmem:[#allocation1 + $0x11] ss:$2 sm:$0xff] %v1094_v0  ;;  %v1103_v3 = vld.sshfl [vmem:[#allocation1] sm:$0xff pattern:$0x75316420] }
  0x39   : > { %v1105_v4 = vld.sshfl [vmem:[#allocation1 + $0x8] sm:$0xff pattern:$0x75316420] }
  0x3a   : > { %249 = vst [vmem:[#allocation1 + $0x1] ss:$2 sm:$0xff] %v1096_v1 }
  0x3f   : > { %v254_v5 = vld.sshfl [vmem:[#allocation1 + $0x10] sm:$0xff pattern:$0x75316420]  ;;  %v255_v6 = vld.sshfl [vmem:[#allocation1 + $0x18] sm:$0xff pattern:$0x75316420] }
  0x40   : > { %273 = vst [vmem:[#allocation1 + $0x10] ss:$2 sm:$0xff] %v1094_v0  ;;  %v748_v7 = vpack.i.bf16 %v255_v6, %v254_v5 }
  0x41   : > { %v1109_v8 = vld.sshfl [vmem:[#allocation1] sm:$0xff pattern:$0x75316420]  ;;  %v1111_v9 = vld.sshfl [vmem:[#allocation1 + $0x8] sm:$0xff pattern:$0x75316420] }
  0x42   : > { %749 = vrot.lane.b32.xlu0 %v748_v7, %s953_s22  ;;  %271 = vst [vmem:[#allocation1] ss:$2 sm:$0xff] %v1096_v1  ;;  %v813_v46 = vpack.i.bf16 %v1111_v9, %v1109_v8 }
  0x47   : > { %v276_v10 = vld.sshfl [vmem:[#allocation1 + $0x10] sm:$0xff pattern:$0x75316420]  ;;  %v277_v11 = vld.sshfl [vmem:[#allocation1 + $0x18] sm:$0xff pattern:$0x75316420] }
  0x48   : > { %v753_v12 = vpack.i.bf16 %v277_v11, %v276_v10  ;;  %296 = vst [vmem:[#allocation1 + $0x11] ss:$2 sm:$0xff] %v1094_v0 }
  0x49   : > { %v1116_v13 = vld.sshfl [vmem:[#allocation1] sm:$0xff pattern:$0x75316420]  ;;  %v1118_v14 = vld.sshfl [vmem:[#allocation1 + $0x8] sm:$0xff pattern:$0x75316420] }
  0x4a   : > { %754 = vrot.lane.b32.xlu2 %v753_v12, %s954_s27  ;;  %294 = vst [vmem:[#allocation1 + $0x1] ss:$2 sm:$0xff] %v1096_v1  ;;  %v803_v37 = vpack.i.bf16 %v1118_v14, %v1116_v13 }
  0x4f   : > { %v299_v15 = vld.sshfl [vmem:[#allocation1 + $0x10] sm:$0xff pattern:$0x75316420]  ;;  %v300_v16 = vld.sshfl [vmem:[#allocation1 + $0x18] sm:$0xff pattern:$0x75316420] }
  0x50   : > { %318 = vst [vmem:[#allocation1 + $0x10] ss:$2 sm:$0xff] %v1094_v0  ;;  %v758_v17 = vpack.i.bf16 %v300_v16, %v299_v15 }
  0x51   : > { %v297_v18 = vld.sshfl [vmem:[#allocation1] sm:$0xff pattern:$0x75316420]  ;;  %v298_v19 = vld.sshfl [vmem:[#allocation1 + $0x8] sm:$0xff pattern:$0x75316420] }
  0x52   : > { %316 = vst [vmem:[#allocation1] ss:$2 sm:$0xff] %v1096_v1  ;;  %759 = vrot.lane.b32.xlu0 %v758_v17, %s955_s15  ;;  %v808_v50 = vpack.i.bf16 %v298_v19, %v297_v18 }
  0x57   : > { %v321_v20 = vld.sshfl [vmem:[#allocation1 + $0x10] sm:$0xff pattern:$0x75316420]  ;;  %v322_v21 = vld.sshfl [vmem:[#allocation1 + $0x18] sm:$0xff pattern:$0x75316420] }
  0x58   : > { %v763_v22 = vpack.i.bf16 %v322_v21, %v321_v20  ;;  %341 = vst [vmem:[#allocation1 + $0x11] ss:$2 sm:$0xff] %v1094_v0 }
  0x59   : > { %v319_v23 = vld.sshfl [vmem:[#allocation1] sm:$0xff pattern:$0x75316420]  ;;  %v320_v24 = vld.sshfl [vmem:[#allocation1 + $0x8] sm:$0xff pattern:$0x75316420] }
  0x5a   : > { %764 = vrot.lane.b32.xlu2 %v763_v22, %s956_s16  ;;  %v768_v25 = vpack.i.bf16 %v320_v24, %v319_v23  ;;  %339 = vst [vmem:[#allocation1 + $0x1] ss:$2 sm:$0xff] %v1096_v1 }
  0x5c   : > { %769 = vrot.lane.b32.xlu1 %v768_v25, %s956_s16 }
  0x5f   : > { %v344_v26 = vld.sshfl [vmem:[#allocation1 + $0x10] sm:$0xff pattern:$0x75316420]  ;;  %v345_v27 = vld.sshfl [vmem:[#allocation1 + $0x18] sm:$0xff pattern:$0x75316420] }
  0x60   : > { %v773_v28 = vpack.i.bf16 %v345_v27, %v344_v26  ;;  %363 = vst [vmem:[#allocation1 + $0x10] ss:$2 sm:$0xff] %v1094_v0 }
  0x61   : > { %v342_v29 = vld.sshfl [vmem:[#allocation1] sm:$0xff pattern:$0x75316420]  ;;  %v343_v30 = vld.sshfl [vmem:[#allocation1 + $0x8] sm:$0xff pattern:$0x75316420] }
  0x62   : > { %774 = vrot.lane.b32.xlu2 %v773_v28, %s957_s21  ;;  %361 = vst [vmem:[#allocation1] ss:$2 sm:$0xff] %v1096_v1  ;;  %v778_v31 = vpack.i.bf16 %v343_v30, %v342_v29 }
  0x67   : > { %v366_v32 = vld.sshfl [vmem:[#allocation1 + $0x10] sm:$0xff pattern:$0x75316420]  ;;  %v367_v33 = vld.sshfl [vmem:[#allocation1 + $0x18] sm:$0xff pattern:$0x75316420] }
  0x68   : > { %v783_v34 = vpack.i.bf16 %v367_v33, %v366_v32  ;;  %386 = vst [vmem:[#allocation1 + $0x11] ss:$2 sm:$0xff] %v1094_v0 }
  0x69   : > { %v364_v35 = vld.sshfl [vmem:[#allocation1] sm:$0xff pattern:$0x75316420]  ;;  %v365_v36 = vld.sshfl [vmem:[#allocation1 + $0x8] sm:$0xff pattern:$0x75316420] }
  0x6a   : > { %784 = vrot.lane.b32.xlu1 %v783_v34, %s958_s24  ;;  %779 = vrot.lane.b32.xlu2 %v778_v31, %s957_s21  ;;  %384 = vst [vmem:[#allocation1 + $0x1] ss:$2 sm:$0xff] %v1096_v1  ;;  %v788_v38 = vpack.i.bf16 %v365_v36, %v364_v35 }
  0x6f   : > { %v389_v39 = vld.sshfl [vmem:[#allocation1 + $0x10] sm:$0xff pattern:$0x75316420]  ;;  %v390_v40 = vld.sshfl [vmem:[#allocation1 + $0x18] sm:$0xff pattern:$0x75316420] }
  0x70   : > { %408 = vst [vmem:[#allocation1 + $0x10] ss:$2 sm:$0xff] %v1094_v0  ;;  %v793_v44 = vpack.i.bf16 %v390_v40, %v389_v39 }
  0x71   : > { %v387_v41 = vld.sshfl [vmem:[#allocation1] sm:$0xff pattern:$0x75316420]  ;;  %v388_v42 = vld.sshfl [vmem:[#allocation1 + $0x8] sm:$0xff pattern:$0x75316420] }
  0x72   : > { %789 = vrot.lane.b32.xlu1 %v788_v38, %s958_s24  ;;  %v798_v43 = vpack.i.bf16 %v388_v42, %v387_v41  ;;  %406 = vst [vmem:[#allocation1] ss:$2 sm:$0xff] %v1096_v1 }
  0x74   : > { %799 = vrot.lane.b32.xlu2 %v798_v43, %s959_s25 }
  0x77   : > { %v411_v45 = vld.sshfl [vmem:[#allocation1 + $0x10] sm:$0xff pattern:$0x75316420]  ;;  %v412_v47 = vld.sshfl [vmem:[#allocation1 + $0x18] sm:$0xff pattern:$0x75316420] }
  0x78   : > { %417 = vrot.lane.b32.xlu0 %v411_v45, %s960_s26 }
  0x79   : > { %v410_v48 = vld.sshfl [vmem:[#allocation1 + $0x8] sm:$0xff pattern:$0x75316420]  ;;  %v409_v49 = vld.sshfl [vmem:[#allocation1] sm:$0xff pattern:$0x75316420] }
  0x7a   : > { %794 = vrot.lane.b32.xlu1 %v793_v44, %s959_s25  ;;  %s900_s25 = scalar_lea.hbm %s1262_s4, 48 }
  0x7c   : > { %814 = vrot.lane.b32.xlu2 %v813_v46, %s953_s22  ;;  %s580_s22 = sshll.u32 %s576_s13, 4  ;;  %s581_s22 = int_to_ptr.hbm [resolvable:$true] %s580_s22 }
  0x80   : > { %419 = vrot.lane.b32.xlu0 %v412_v47, %s960_s26  ;;  %v232_v47 = vld [vmem:[#allocation6] sm:$0xff] }
  0x82   : > { %415 = vrot.lane.b32.xlu1 %v410_v48, %s960_s26 }
  0x88   : > { %413 = vrot.lane.b32.xlu0 %v409_v49, %s960_s26 }
  0x8a   : > { %809 = vrot.lane.b32.xlu1 %v808_v50, %s955_s15  ;;  %s894_s15 = sshra.s32 %s581_s22, 4  ;;  %s895_s15 = int_to_ptr.hbm [resolvable:$true] %s894_s15 }
  0x8b   : > { %s896_s16 = scalar_lea.hbm %s895_s15, 24  ;;  %p901_p9 = scmp.lt.s32.totalorder %s895_s15, %s1262_s4 }
  0x8c   : > { %p897_p1 = scmp.ne.s32.totalorder %s895_s15, %s896_s16  ;;  %p902_p10 = scmp.lt.s32.totalorder %s900_s25, %s896_s16 }
  0x8e   : > { %p898_p4 = pnand %p897_p1, %p1055_p3  ;;  %p903_p2 = por %p902_p10, %p901_p9 }
  0x90   : > { %804 = vrot.lane.b32.xlu0 %v803_v37, %s954_s27  ;;  %s565_s27 = scalar_lea.sflag [#allocation5], %s1082_s9  ;;  %p899_p8 = pneg %p898_p4 }
  0x92   : > { %p904_p11 = pnand %p903_p2, %p899_p8 }
  0xa4   : > { %v1140_v51 = vpop.permute.xlu2 %754 }
  0xa5   : > { %v757_v61 = vunpack.i.h.bf16 %v1140_v51  ;;  %v756_v62 = vunpack.i.l.bf16 %v1140_v51 }
  0xa7   : > { %v289_v23 = vsel %vm286_vm2, %v756_v62, %v757_v61 }
  0xb4   : > { %v765_v53 = vpop.permute.xlu2 %764  ;;  %v1144_v54 = vpop.permute.xlu0 %749 }
  0xb5   : > { %v767_v0 = vunpack.i.h.bf16 %v765_v53  ;;  %v766_v1 = vunpack.i.l.bf16 %v765_v53  ;;  %v752_v5 = vunpack.i.h.bf16 %v1144_v54  ;;  %v751_v6 = vunpack.i.l.bf16 %v1144_v54  ;;  %v233_v54 = vld [vmem:[%s1260_s2] sm:$0x7] }
  0xb7   : > { %v334_v27 = vsel %vm331_vm0, %v766_v1, %v767_v0  ;;  %v267_v41 = vsel %vm264_vm8, %v751_v6, %v752_v5 }
  0xb8   : > { %v428_v48 = vsel %vm425_vm7, %v1100_v2, %v267_v41 }
  0xbc   : > { %v775_v56 = vpop.permute.xlu2 %774 }
  0xbd   : > { %v777_v9 = vunpack.i.h.bf16 %v775_v56  ;;  %v776_v10 = vunpack.i.l.bf16 %v775_v56 }
  0xbf   : > { %v357_v28 = vsel %vm354_vm1, %v776_v10, %v777_v9 }
  0xc0   : > { %v434_v38 = vsel %vm425_vm7, %v334_v27, %v357_v28 }
  0xc4   : > { %v1146_v57 = vpop.permute.xlu0 %759  ;;  %v1150_v59 = vpop.permute.xlu2 %779 }
  0xc5   : > { %v782_v13 = vunpack.i.h.bf16 %v1150_v59  ;;  %v762_v15 = vunpack.i.h.bf16 %v1146_v57  ;;  %v761_v16 = vunpack.i.l.bf16 %v1146_v57  ;;  %v781_v39 = vunpack.i.l.bf16 %v1150_v59 }
  0xc6   : > { %v511_v57 = vperm.slane %v233_v54, 2 }
  0xc7   : > { %v356_v31 = vsel %vm354_vm1, %v782_v13, %v776_v10  ;;  %v312_v32 = vsel %vm309_vm3, %v761_v16, %v762_v15  ;;  %v510_v15 = vperm.slane %v233_v54, 1 }
  0xc8   : > { %v431_v43 = vsel %vm425_vm7, %v289_v23, %v312_v32 }
  0xce   : > { %v1142_v52 = vpop.permute.xlu1 %769  ;;  %v800_v14 = vpop.permute.xlu2 %799 }
  0xcf   : > { %v802_v17 = vunpack.i.h.bf16 %v800_v14  ;;  %v772_v18 = vunpack.i.h.bf16 %v1142_v52  ;;  %v801_v33 = vunpack.i.l.bf16 %v800_v14  ;;  %v771_v40 = vunpack.i.l.bf16 %v1142_v52 }
  0xd0   : > { %v355_v52 = vsel %vm354_vm1, %v781_v39, %v782_v13 }
  0xd1   : > { %v333_v36 = vsel %vm331_vm0, %v772_v18, %v766_v1  ;;  %v400_v46 = vsel %vm399_vm6, %v801_v33, %v802_v17  ;;  %v332_v50 = vsel %vm331_vm0, %v771_v40, %v772_v18 }
  0xd2   : > { %v433_v42 = vsel %vm425_vm7, %v333_v36, %v356_v31  ;;  %v432_v2 = vsel %vm425_vm7, %v332_v50, %v355_v52 }
  0xdc   : > { %v785_v55 = vpop.permute.xlu1 %784 }
  0xdd   : > { %v787_v11 = vunpack.i.h.bf16 %v785_v55  ;;  %v786_v12 = vunpack.i.l.bf16 %v785_v55  ;;  %v815_v55 = vpop.permute.xlu2 %814 }
  0xdf   : > { %v379_v25 = vsel %vm376_vm5, %v786_v12, %v787_v11 }
  0xe4   : > { %v1148_v58 = vpop.permute.xlu1 %789 }
  0xe5   : > { %v792_v19 = vunpack.i.h.bf16 %v1148_v58  ;;  %v791_v34 = vunpack.i.l.bf16 %v1148_v58  ;;  %v816_v58 = vunpack.i.l.bf16 %v815_v55 }
  0xe7   : > { %v378_v35 = vsel %vm376_vm5, %v792_v19, %v786_v12  ;;  %v377_v45 = vsel %vm376_vm5, %v791_v34, %v792_v19 }
  0xe8   : > { %v435_v53 = vsel %vm425_vm7, %v377_v45, %v400_v46 }
  0xea   : > { %v418_v60 = vpop.permute.xlu0 %417 }
  0xec   : > { %v795_v63 = vpop.permute.xlu1 %794 }
  0xed   : > { %v797_v7 = vunpack.i.h.bf16 %v795_v63  ;;  %v796_v8 = vunpack.i.l.bf16 %v795_v63 }
  0xef   : > { %v402_v21 = vsel %vm399_vm6, %v796_v8, %v797_v7  ;;  %v401_v26 = vsel %vm399_vm6, %v802_v17, %v796_v8 }
  0xf0   : > { %v437_v30 = vsel %vm425_vm7, %v379_v25, %v402_v21  ;;  %v436_v37 = vsel %vm425_vm7, %v378_v35, %v401_v26 }
  0xf2   : > { %v420_v20 = vpop.permute.xlu0 %419 }
  0xf3   : > { %v424_v22 = vsel %vm421_vm4, %v418_v60, %v420_v20 }
  0xf4   : > { %675 = vmatpush.msk.msra.mxu2 %vm425_vm7, %v424_v22  ;;  %v416_v24 = vpop.permute.xlu1 %415 }
  0xf5   : > { %v423_v29 = vsel %vm421_vm4, %v416_v24, %v418_v60  ;;  %v817_v60 = vunpack.i.h.bf16 %v815_v55 }
  0xf6   : > { %673 = vmatpush.msk.msra.mxu1 %vm425_vm7, %v423_v29  ;;  %500 = vmatpush.msra.mxu2 %v437_v30 }
  0xf7   : > { %v265_v7 = vsel %vm264_vm8, %v816_v58, %v817_v60  ;;  %v266_v11 = vsel %vm264_vm8, %v817_v60, %v751_v6  ;;  %v509_v6 = vperm.slane %v233_v54, 0 }
  0xf8   : > { %480 = vmatpush.msra.mxu1 %v436_v37  ;;  %501 = vmatpush.msra.mxu2 %v434_v38  ;;  %v426_v14 = vsel %vm425_vm7, %v1103_v3, %v265_v7  ;;  %v427_v51 = vsel %vm425_vm7, %v1105_v4, %v266_v11 }
  0xfa   : > { %481 = vmatpush.msra.mxu1 %v433_v42  ;;  %502 = vmatpush.msra.mxu2 %v431_v43  ;;  %v414_v44 = vpop.permute.xlu0 %413  ;;  %v554_v43 = vstv %s234_s5 }
  0xfb   : > { %v422_v49 = vsel %vm421_vm4, %v414_v44, %v416_v24 }
  0xfc   : > { %503 = vmatpush.msra.mxu2 %v428_v48  ;;  %671 = vmatpush.msk.msra.mxu0 %vm425_vm7, %v422_v49  ;;  %v810_v56 = vpop.permute.xlu1 %809 }
  0xfd   : > { %676 = vmatmul.msk.f32.vlgmr.msra.gmra.mxu2 %vm438_vm9, %v232_v47  ;;  %v811_v59 = vunpack.i.l.bf16 %v810_v56  ;;  %v812_v61 = vunpack.i.h.bf16 %v810_v56 }
  0xfe   : > { %460 = vmatpush.msra.mxu0 %v435_v53 }
  0xff   : > { %v310_v5 = vsel %vm309_vm3, %v811_v59, %v812_v61  ;;  %v311_v10 = vsel %vm309_vm3, %v812_v61, %v761_v16 }
 0x100   : > { %461 = vmatpush.msra.mxu0 %v432_v2 }
 0x102   : > { %v805_v63 = vpop.permute.xlu0 %804 }
 0x103   : > { %v807_v0 = vunpack.i.h.bf16 %v805_v63  ;;  %v806_v1 = vunpack.i.l.bf16 %v805_v63 }
 0x105   : > { %v287_v8 = vsel %vm286_vm2, %v806_v1, %v807_v0  ;;  %v288_v9 = vsel %vm286_vm2, %v807_v0, %v756_v62 }
 0x106   : > { %v429_v12 = vsel %vm425_vm7, %v287_v8, %v310_v5  ;;  %v430_v13 = vsel %vm425_vm7, %v288_v9, %v311_v10 }
 0x107   : > { %462 = vmatpush.msra.mxu0 %v429_v12  ;;  %482 = vmatpush.msra.mxu1 %v430_v13 }
 0x109   : > { %463 = vmatpush.msra.mxu0 %v426_v14  ;;  %483 = vmatpush.msra.mxu1 %v427_v51 }
 0x10a   : > { %672 = vmatmul.msk.f32.vlgmr.msra.gmra.mxu0 %vm438_vm9, %v232_v47  ;;  %674 = vmatmul.msk.f32.vlgmr.msra.gmra.mxu1 %vm438_vm9, %v232_v47 }
 0x180   : > { %v505_v62 = vpop.f32.mrf.mxu2 }
 0x181   : > { %v517_v3 = vmul.f32 %v511_v57, %v505_v62 }
 0x183   : > { %v525_v22 = vmul.f32 %v517_v3, %v517_v3 }
 0x187   : > { %v465_v16 = vpop.f32.mrf.mxu0  ;;  %v485_v17 = vpop.f32.mrf.mxu1 }
 0x188   : > { %v515_v18 = vmul.f32 %v509_v6, %v465_v16  ;;  %v516_v19 = vmul.f32 %v510_v15, %v485_v17 }
 0x18a   : > { %v523_v4 = vmul.f32 %v515_v18, %v515_v18  ;;  %v518_v20 = vadd.f32 %v516_v19, %v515_v18  ;;  %v524_v21 = vmul.f32 %v516_v19, %v516_v19 }
 0x18c   : > { %v519_v23 = vadd.f32 %v518_v20, %v517_v3  ;;  %v526_v24 = vadd.f32 %v524_v21, %v523_v4 }
 0x18e   : > { %520 = vadd.xlane.f32.xlu0 %v519_v23  ;;  %v527_v25 = vadd.f32 %v526_v24, %v525_v22 }
 0x190   : > { %528 = vadd.xlane.f32.xlu1 %v527_v25 }
 0x201   : > { %v521_v26 = vpop.xlane.xlu0 %520 }
 0x202   : > { %v522_v27 = vmul.f32 0.00390625, %v521_v26 }
 0x203   : > { %v529_v28 = vpop.xlane.xlu1 %528 }
 0x204   : > { %v530_v29 = vmul.f32 0.00390625, %v529_v28  ;;  %v531_v30 = vmul.f32 %v522_v27, %v522_v27  ;;  %v534_v40 = vsub.f32 %v465_v16, %v522_v27  ;;  %v535_v41 = vsub.f32 %v485_v17, %v522_v27 }
 0x205   : > { %v536_v42 = vsub.f32 %v505_v62, %v522_v27 }
 0x206   : > { %v532_v31 = vsub.f32 %v530_v29, %v531_v30 }
 0x208   : > { %v533_v32 = vmax.f32 %v532_v31, 0.0 }
 0x20a   : > { %v537_v33 = vadd.f32 1e-05, %v533_v32 }
 0x20c   : > { %818 = vrsqrt.f32 %v537_v33  ;;  %vm544_vm11 = vweird.f32 %v537_v33 }
 0x212   : > { %v819_v34 = vpop.eup %818 }
 0x213   : > { %v539_v35 = vmul.f32 %v819_v34, %v537_v33  ;;  %vm545_vm10 = vweird.f32 %v819_v34 }
 0x214   : > { %vm546_vm12 = vmor %vm544_vm11, %vm545_vm10 }
 0x215   : > { %v540_v36 = vmul.f32 %v819_v34, %v539_v35 }
 0x217   : > { %v541_v37 = vmul.f32 0.5, %v540_v36 }
 0x219   : > { %v542_v38 = vsub.f32 1.5, %v541_v37 }
 0x21b   : > { %v543_v39 = vmul.f32 %v819_v34, %v542_v38 }
 0x21d   : > { %v547_v44 = vsel %vm546_vm12, %v819_v34, %v543_v39 }
 0x21e   : > { %v548_v45 = vmul.f32 %v547_v44, %v534_v40  ;;  %v549_v46 = vmul.f32 %v547_v44, %v535_v41  ;;  %v550_v47 = vmul.f32 %v547_v44, %v536_v42 }
 0x220   : > { %v555_v48 = vmul.f32 %v554_v43, %v548_v45  ;;  %v556_v49 = vmul.f32 %v554_v43, %v549_v46  ;;  %v557_v50 = vmul.f32 %v554_v43, %v550_v47  ;;  %vm551_vm13 = vcmp.ge.f32.partialorder %v548_v45, 0.0 }
 0x221   : > { %vm552_vm14 = vcmp.ge.f32.partialorder %v549_v46, 0.0  ;;  %vm553_vm15 = vcmp.ge.f32.partialorder %v550_v47, 0.0 }
 0x222   : > { %v558_v52 = vsel %vm551_vm13, %v548_v45, %v555_v48  ;;  %v559_v53 = vsel %vm552_vm14, %v549_v46, %v556_v49  ;;  %v560_v55 = vsel %vm553_vm15, %v550_v47, %v557_v50 }
 0x223   : > { %561 = vst [vmem:[%s231_s3] sm:$0xff] %v558_v52 }
 0x224   : > { %562 = vst [vmem:[%s231_s3 + $0x8] sm:$0xff] %v559_v53 }
 0x225   : > { %563 = vst [vmem:[%s231_s3 + $0x10] sm:$0xff] %v560_v55 }
 0x226   : > { %907 = shalt.err (!%p904_p11)
}
 0x227   : > { %689 = dma.vmem_to_hbm [thread:$0]  (%p1055_p3), %s579_s14, 384, %s581_s22, %s565_s27  }
 0x228 PF: > { %s592_s9 = sand.u32 1, %s938_s17   ;;  %p1268_p12 = scmp.ge.s32.totalorder %s950_s20, 2 }
 0x229   : > { %s593_s29 = scalar_lea.sflag [#allocation5], %s592_s9 }
 0x22a   : > { %p700_p13 = pnand %p1268_p12, %p1024_p6 }
 0x22c   : > { %p701_p0 = pneg %p700_p13 }
 0x22e   : > { %933 = dma.done.wait (%p701_p0), %s593_s29, 384  }
 0x22f   : > { %935 = vsyncadd (%p701_p0), %s593_s29, 4294966912  ;;  %p19_p5 = scmp.ge.s32.totalorder %s1042_s30, 4   ;;  %s1269_s17 = smov %s942_s18 }
 0x230   : > { %s1270_s18 = smov %s946_s19  ;;  %s1271_s19 = smov %s1051_s7 }
 0x231   : > { %s1272_s20 = smov %s1042_s30  ;;  %21 = sbr.rel (!%p19_p5) target bundleno = 8 (0x8), region = 98 }
 0x236   :  { %599 = vsyncpa [#allocation4], 1 }
 0x237   :  { %601 = vsyncpa [#allocation4 + $0x1], 1 }
 0x238   :  { %602 = vsyncpa [#allocation7], 1 }
 0x239   :  { %603 = vsyncpa [#allocation5], 1 }
 0x23a   :  { %605 = vsyncpa [#allocation5 + $0x1], 1 }

</bundles_post_ra>
